<compile_context>
chip_gen: v7x
topology: tpu7x:2x2x1
jax: 0.10.0
libtpu: 0.0.40
codegen_flags: <defaults>
</compile_context>

<pallas_src>
import jax
import jax.numpy as jnp
from jax import lax
from jax.experimental import pallas as pl
from jax.experimental.pallas import tpu as pltpu

# Problem shape implied by the module: batch-of-rows N, feature_size F,
# embedding_size E.
N, F, E = 8, 32, 32
TB = 16            # problems per grid step
TBN = TB * N       # 128 rows per step == 128 output lanes (lane-dense)


# ---------------------------------------------------------------------------
# Fused kernel, one grid step = TB independent MemoryUnit problems:
#   emb  = tanh(x @ W + b)                                   (TBN, E)
#   g    = emb @ emb.T  (contract E; per-problem grams are the
#                        8x8 diagonal blocks of this matrix)  (TBN, TBN)
#   p    = blockwise softmax(g) via masked exp + row sum      (TBN, TBN)
#   out  = column sum(p) / N  == per-problem mean over rows   (1, TBN)
# ---------------------------------------------------------------------------
def memory_unit_kernel(x_ref, w_ref, b_ref, mask_ref, out_ref):
    # x_ref: (TBN, F)  w_ref: (F, E)  b_ref: (1, E)
    # mask_ref: (TBN, TBN) block-diagonal 0/1 mask   out_ref: (1, TBN)
    emb = jnp.tanh(
        jnp.dot(x_ref[...], w_ref[...], preferred_element_type=jnp.float32)
        + b_ref[...]
    )                                                             # (TBN, E)

    # One dense MXU pass for all TB grams; contracting dim 1 of both operands
    # avoids an explicit transpose of emb. Cross-problem entries are junk and
    # are zeroed by the mask below.
    g = lax.dot_general(
        emb, emb, (((1,), (1,)), ((), ())), preferred_element_type=jnp.float32
    )                                                             # (TBN, TBN)

    # Constant-shift softmax stabilization. Valid because emb = tanh(...) is
    # bounded in [-1, 1] => |g| <= E, so exp(g - E) lies in [exp(-2E), 1]:
    # no overflow, no harmful underflow.
    # NOTE: revisit this shift if the embed activation ever changes.
    p = jnp.exp(g - float(E)) * mask_ref[...]                     # masked exp

    denom = jnp.sum(p, axis=1, keepdims=True)                     # (TBN, 1)
    # EUP approximate reciprocal + one Newton-Raphson refinement (error ~eps^2)
    # instead of a VALU divide.
    r = pl.reciprocal(denom, approx=True)
    r = r * (2.0 - denom * r)
    p = p * r                                                     # row softmax

    # p[i, c] is nonzero only when row i and column c belong to the same
    # problem block, so the full column sum over all TBN rows equals each
    # problem's column sum over its own N rows. One cross-sublane reduce gives
    # the lane-dense (1, TBN) result (TB problems x N probabilities) directly.
    out_ref[...] = jnp.sum(p, axis=0, keepdims=True) * (1.0 / N)


def _block_mask():
    """(TBN, TBN) f32 block-diagonal mask: 1 inside each problem's NxN block."""
    ids = jnp.arange(TBN, dtype=jnp.int32) // N
    return (ids[:, None] == ids[None, :]).astype(jnp.float32)


def memory_unit_forward_batched(xb, w, b):
    """xb: (B, N, F) independent problems, w: (F, E), b: (1, E) -> (B, N)."""
    orig_b = xb.shape[0]
    pad = (-orig_b) % TB
    if pad:
        xb = jnp.concatenate([xb, jnp.zeros((pad, N, F), xb.dtype)], axis=0)
    B = xb.shape[0]
    steps = B // TB

    x2d = xb.reshape(B * N, F)     # stack problems along the sublane axis
    mask = _block_mask()           # resident in VMEM across all grid steps

    cost = pl.CostEstimate(
        flops=2 * B * N * F * E            # embed matmul
        + 2 * steps * TBN * TBN * E        # gram matmuls
        + 6 * steps * TBN * TBN,           # softmax / mean elementwise work
        transcendentals=B * N * E + steps * TBN * TBN,   # tanh + exp
        bytes_accessed=4 * (B * N * F + F * E + E + TBN * TBN + steps * TBN),
    )

    out = pl.pallas_call(
        memory_unit_kernel,
        out_shape=jax.ShapeDtypeStruct((steps, 1, TBN), jnp.float32),
        grid=(steps,),
        in_specs=[
            pl.BlockSpec((TBN, F), lambda i: (i, 0)),      # per-step problems
            pl.BlockSpec((F, E), lambda i: (0, 0)),        # weight (resident)
            pl.BlockSpec((1, E), lambda i: (0, 0)),        # bias (resident)
            pl.BlockSpec((TBN, TBN), lambda i: (0, 0)),    # block mask (resident)
        ],
        out_specs=pl.BlockSpec((None, 1, TBN), lambda i: (i, 0, 0)),
        compiler_params=pltpu.CompilerParams(
            # Batch axis is embarrassingly parallel -> sharded across v7x's
            # 2 TensorCores; harmless no-op on v5e/v6e (1 TC).
            dimension_semantics=("parallel",),
            # No vmem_limit override: per-step footprint is < 1 MiB, far below
            # VMEM on every generation (64 MiB v7x / 128 MiB v5e,v6e) -- do not
            # add tiling here.
        ),
        cost_estimate=cost,
    )(x2d, w, b, mask)

    return out.reshape(B, N)[:orig_b]


def memory_unit_forward(x, w, b):
    """Single-problem forward matching MemoryUnit.forward: x (N, F) -> (N,)."""
    return memory_unit_forward_batched(x[None], w, b)[0]


# ---------------------------------------------------------------------------
# Pure-JAX reference (mirrors the PyTorch forward) for a correctness check.
# ---------------------------------------------------------------------------
def reference_forward(x, w, b):
    emb = jnp.tanh(x @ w + b)
    gram = emb @ emb.T
    prob = jax.nn.softmax(gram, axis=1)
    return jnp.mean(prob, axis=0)  # (N,)


def init_params(key):
    # Match nn.Linear's default init: U(-1/sqrt(fan_in), 1/sqrt(fan_in)).
    scale = 1.0 / jnp.sqrt(F)
    kw, kb = jax.random.split(key)
    w = jax.random.uniform(kw, (F, E), jnp.float32, -scale, scale)
    b = jax.random.uniform(kb, (1, E), jnp.float32, -scale, scale)
    return w, b


if __name__ == "__main__":
    key = jax.random.PRNGKey(0)
    pkey, xkey = jax.random.split(key)
    w, b = init_params(pkey)

    B = 64  # many independent MemoryUnit problems in one launch
    xb = jax.random.normal(xkey, (B, N, F), jnp.float32)

    out_b = jax.block_until_ready(memory_unit_forward_batched(xb, w, b))
    ref_b = jax.vmap(lambda xi: reference_forward(xi, w, b))(xb)
    assert out_b.shape == (B, N), out_b.shape
    assert jnp.allclose(out_b, ref_b, atol=1e-4, rtol=1e-4), float(
        jnp.max(jnp.abs(out_b - ref_b)))

    # Single-problem path matching the module's forward signature.
    out_1 = jax.block_until_ready(memory_unit_forward(xb[0], w, b))
    assert out_1.shape == (N,), out_1.shape
    assert jnp.allclose(out_1, ref_b[0], atol=1e-4, rtol=1e-4), float(
        jnp.max(jnp.abs(out_1 - ref_b[0])))

    # TODO(synk): the module's printDebug side-effect has no Pallas equivalent
    # (pl.debug_print needs interpret mode or log-recorder flags) and is
    # intentionally omitted.
    print("KERNEL_OK")
</pallas_src>

<mosaic_0001>
module attributes {stable_mosaic.version = 11 : i64} {
  func.func @memory_unit_kernel(%arg0: i32, %arg1: memref<128x32xf32, #tpu.memory_space<vmem>>, %arg2: memref<32x32xf32, #tpu.memory_space<vmem>>, %arg3: memref<1x32xf32, #tpu.memory_space<vmem>>, %arg4: memref<128x128xf32, #tpu.memory_space<vmem>>, %arg5: memref<1x1x128xf32, #tpu.memory_space<vmem>>) attributes {dimension_semantics = [#tpu.dimension_semantics<parallel>], iteration_bounds = array<i64: 4>, scalar_prefetch = 0 : i64, scratch_operands = 0 : i64, tpu.core_type = #tpu.core_type<tc>, window_params = [{transform_indices = @transform_0, window_bounds = array<i64: 128, 32>}, {pipeline_mode = #tpu.pipeline_mode<synchronous>, transform_indices = @transform_1, window_bounds = array<i64: 32, 32>}, {pipeline_mode = #tpu.pipeline_mode<synchronous>, transform_indices = @transform_2, window_bounds = array<i64: 1, 32>}, {pipeline_mode = #tpu.pipeline_mode<synchronous>, transform_indices = @transform_3, window_bounds = array<i64: 128, 128>}, {transform_indices = @transform_4, window_bounds = array<i64: 1, 1, 128>}]} {
    %c0 = arith.constant 0 : index
    %c0_0 = arith.constant 0 : index
    %0 = vector.load %arg1[%c0, %c0_0] : memref<128x32xf32, #tpu.memory_space<vmem>>, vector<128x32xf32>
    %c0_1 = arith.constant 0 : index
    %c0_2 = arith.constant 0 : index
    %1 = vector.load %arg2[%c0_1, %c0_2] : memref<32x32xf32, #tpu.memory_space<vmem>>, vector<32x32xf32>
    %cst = arith.constant dense<0.000000e+00> : vector<128x32xf32>
    %2 = tpu.matmul %0, %1, %cst {dimension_numbers = #tpu.dot_dimension_numbers<[1], [0], [0], [1], [0, 0, 1, 1], [], []>} : vector<128x32xf32>, vector<32x32xf32>, vector<128x32xf32> -> vector<128x32xf32>
    %c0_3 = arith.constant 0 : index
    %c0_4 = arith.constant 0 : index
    %3 = vector.load %arg3[%c0_3, %c0_4] : memref<1x32xf32, #tpu.memory_space<vmem>>, vector<1x32xf32>
    %4 = vector.broadcast %3 : vector<1x32xf32> to vector<128x32xf32>
    %5 = arith.addf %2, %4 : vector<128x32xf32>
    %6 = math.tanh %5 : vector<128x32xf32>
    %cst_5 = arith.constant dense<0.000000e+00> : vector<128x128xf32>
    %7 = tpu.matmul %6, %6, %cst_5 {dimension_numbers = #tpu.dot_dimension_numbers<[1], [1], [0], [0], [0, 0, 1, 0], [], []>} : vector<128x32xf32>, vector<128x32xf32>, vector<128x128xf32> -> vector<128x128xf32>
    %cst_6 = arith.constant 3.200000e+01 : f32
    %8 = vector.broadcast %cst_6 : f32 to vector<128x128xf32>
    %9 = arith.subf %7, %8 : vector<128x128xf32>
    %10 = math.exp %9 : vector<128x128xf32>
    %c0_7 = arith.constant 0 : index
    %c0_8 = arith.constant 0 : index
    %11 = vector.load %arg4[%c0_7, %c0_8] : memref<128x128xf32, #tpu.memory_space<vmem>>, vector<128x128xf32>
    %12 = arith.mulf %10, %11 : vector<128x128xf32>
    %cst_9 = arith.constant dense<0.000000e+00> : vector<128xf32>
    %13 = vector.multi_reduction <add>, %12, %cst_9 [1] : vector<128x128xf32> to vector<128xf32>
    %14 = vector.shape_cast %13 : vector<128xf32> to vector<128x1xf32>
    %15 = tpu.reciprocal %14 {approx = true} : vector<128x1xf32> -> vector<128x1xf32>
    %16 = arith.mulf %14, %15 : vector<128x1xf32>
    %cst_10 = arith.constant 2.000000e+00 : f32
    %17 = vector.broadcast %cst_10 : f32 to vector<128x1xf32>
    %18 = arith.subf %17, %16 : vector<128x1xf32>
    %19 = arith.mulf %15, %18 : vector<128x1xf32>
    %20 = vector.broadcast %19 : vector<128x1xf32> to vector<128x128xf32>
    %21 = arith.mulf %12, %20 : vector<128x128xf32>
    %cst_11 = arith.constant dense<0.000000e+00> : vector<128xf32>
    %22 = vector.multi_reduction <add>, %21, %cst_11 [0] : vector<128x128xf32> to vector<128xf32>
    %23 = vector.shape_cast %22 : vector<128xf32> to vector<1x128xf32>
    %cst_12 = arith.constant 1.250000e-01 : f32
    %24 = vector.broadcast %cst_12 : f32 to vector<1x128xf32>
    %25 = arith.mulf %23, %24 : vector<1x128xf32>
    %c0_13 = arith.constant 0 : index
    %c0_14 = arith.constant 0 : index
    %c0_15 = arith.constant 0 : index
    %26 = vector.load %arg5[%c0_13, %c0_14, %c0_15] : memref<1x1x128xf32, #tpu.memory_space<vmem>>, vector<1x1x128xf32>
    %27 = vector.shape_cast %26 : vector<1x1x128xf32> to vector<1x128xf32>
    %28 = vector.shape_cast %25 : vector<1x128xf32> to vector<1x1x128xf32>
    tpu.vector_store %arg5[%c0_13, %c0_14, %c0_15], %28 {strides = array<i32>} : memref<1x1x128xf32, #tpu.memory_space<vmem>>, vector<1x1x128xf32>,
    return
  }
  func.func @transform_0(%arg0: i32) -> (i32, i32) {
    %c0_i32 = arith.constant 0 : i32
    %c0_i32_0 = arith.constant 0 : i32
    return %arg0, %c0_i32 : i32, i32
  }
  func.func @transform_1(%arg0: i32) -> (i32, i32) {
    %c0_i32 = arith.constant 0 : i32
    %c0_i32_0 = arith.constant 0 : i32
    %c0_i32_1 = arith.constant 0 : i32
    return %c0_i32, %c0_i32_0 : i32, i32
  }
  func.func @transform_2(%arg0: i32) -> (i32, i32) {
    %c0_i32 = arith.constant 0 : i32
    %c0_i32_0 = arith.constant 0 : i32
    %c0_i32_1 = arith.constant 0 : i32
    return %c0_i32, %c0_i32_0 : i32, i32
  }
  func.func @transform_3(%arg0: i32) -> (i32, i32) {
    %c0_i32 = arith.constant 0 : i32
    %c0_i32_0 = arith.constant 0 : i32
    %c0_i32_1 = arith.constant 0 : i32
    return %c0_i32, %c0_i32_0 : i32, i32
  }
  func.func @transform_4(%arg0: i32) -> (i32, i32, i32) {
    %c0_i32 = arith.constant 0 : i32
    %c0_i32_0 = arith.constant 0 : i32
    %c0_i32_1 = arith.constant 0 : i32
    return %arg0, %c0_i32, %c0_i32_0 : i32, i32, i32
  }
}

</mosaic_0001>

<bundles_post_ra>
// kernel: tpu_custom_call.1
= control target key start
LH: loop header
LB: loop body
LE: loop exit
PB: predicated region body
PF: predicated region fallthrough
CT: control target
= control target key end

     0   :  { %9 = vsyncpa [#allocation3], 0  ;;  %s1805_s0 = inlined_call_operand.vmem [shape: f32[512,32], index: 0, kind: input, shape index: {}]   ;;  %s1806_s1 = inlined_call_operand.vmem [shape: f32[32,32], index: 1, kind: input, shape index: {}]   ;;  %s1807_s2 = inlined_call_operand.vmem [shape: f32[1,32], index: 2, kind: input, shape index: {}]   ;;  %s1808_s3 = inlined_call_operand.vmem [shape: f32[128,128], index: 3, kind: input, shape index: {}]   ;;  %s1809_s4 = inlined_call_operand.hbm [shape: f32[4,1,128], index: 4, kind: output, shape index: {}]  }
   0x1   :  { %11 = vsyncpa [#allocation3 + $0x1], 0  ;;  %s1421_s15 = smov 0   ;;  %s1423_s16 = smov 0  }
   0x2   :  { %s1425_s17 = smov 0   ;;  %s1427_s18 = smov 0  }
   0x3 LB: > { %s909_s19 = sadd.s32 4294967295, %s1393_s18   ;;  %s910_s20 = sadd.s32 4294967294, %s1393_s18   ;;  %s1393_s18 = sphi %s1427_s18, %s1817_s18   ;;  %s1389_s17 = sphi %s1425_s17, %s1816_s17   ;;  %s1385_s16 = sphi %s1423_s16, %s1815_s16   ;;  %s1381_s15 = sphi %s1421_s15, %s1814_s15  }
   0x4   : > { %s1444_s21 = sadd.s32 1, %s1393_s18   ;;  %s113_s22 = sadd.s32 1, %s1389_s17 }
   0x5   : > { %s110_s23 = ssub.s32 %s1393_s18, %s1444_s21  ;;  %p123_p0 = scmp.ne.s32.totalorder %s1389_s17, %s1385_s16 }
   0x6   : > { %p111_p1 = scmp.eq.s32.totalorder %s110_s23, 0  ;;  %p124_p2 = scmp.eq.s32.totalorder %s909_s19, 3 }
   0x7   : > { %p129_p3 = scmp.ne.s32.totalorder %s1385_s16, %s1381_s15  ;;  %p130_p4 = scmp.eq.s32.totalorder %s910_s20, 3 }
   0x8   : > { %s1454_s24 = scalar_select %p111_p1, %s1389_s17, %s113_s22  }
   0x9   : > { %p1456_p5 = por %p124_p2, %p123_p0  ;;  %p1460_p6 = por %p130_p4, %p129_p3 }
   0xa   : > { %p913_p7 = scmp.ge.s32.totalorder %s1393_s18, 1  ;;  %p166_p8 = scmp.lt.s32.totalorder %s1393_s18, 5 }
   0xc   : > { %p167_p9 = pnand %p913_p7, %p166_p8 }
   0xd   : > { %v213_v0 = vld [vmem:[%s1806_s1] sm:$0xff] (!%p167_p9)  ;;  %v214_v1 = vld [vmem:[%s1806_s1 + $0x8] sm:$0xff] (!%p167_p9)  ;;  %v215_v2 = vld [vmem:[%s1806_s1 + $0x10] sm:$0xff] (!%p167_p9)  ;;  %s1475_s7 = sshll.u32 (!%p167_p9), %s909_s19, 4  ;;  %vm224_vm0 = vcmask (!%p167_p9), 261120   ;;  %s189_s19 = sand.u32 (!%p167_p9), 1, %s1385_s16  }
   0xe   : > { %170 = sbr.rel (%p167_p9) target bundleno = 772 (0x304), region = 36  ;;  %v1124_v3 = vpack.c.bf16 (!%p167_p9), %v214_v1, %v213_v0  ;;  %v216_v4 = vld [vmem:[%s1806_s1 + $0x18] sm:$0xff] (!%p167_p9)  ;;  %p192_p10 = scmp.lt.s32.totalorder (!%p167_p9), %s1475_s7, 63  ;;  %v1522_v22 = vld [vmem:[%s1807_s2] ss:$0 sm:$0xff] (!%p167_p9)  ;;  %vm1535_vm1 = vmpackc.low (!%p167_p9), %vm224_vm0, %vm224_vm0 }
   0xf   : > { %v1128_v5 = vpack.c.bf16 (!%p167_p9), %v216_v4, %v215_v2  ;;  %s190_s20 = scalar_lea.vmem (!%p167_p9), [#allocation2], %s189_s19  ;;  %s1763_s28 = scalar_lea.hbm (!%p167_p9), %s1809_s4, %s1475_s7 }
  0x10   : > { %1125 = vmatprep.subr.bf16.mxu0 (!%p167_p9), %v1124_v3  ;;  %s855_s22 = sshll.u32 (!%p167_p9), %s190_s20, 4  ;;  %s843_s29 = scalar_lea.sflag (!%p167_p9), [#allocation3], %s189_s19  ;;  %s1765_s22 = int_to_ptr.vmem [resolvable:$true] %s855_s22 }
  0x11   : > { %1127 = vmatpush3.bf16.msra.mxu0 (!%p167_p9), %v1124_v3  ;;  %s1331_s30 = scalar_lea.vmem (!%p167_p9), %s1765_s22, 16  ;;  %s1395_s5 = smov (!%p167_p9), [#allocation2]  }
  0x12   : > { %1129 = vmatprep.subr.bf16.mxu0 (!%p167_p9), %v1128_v5  ;;  %p1332_p11 = scmp.ne.s32.totalorder (!%p167_p9), %s1765_s22, %s1331_s30  ;;  %s1335_s6 = sshll.u32 (!%p167_p9), %s1395_s5, 4  ;;  %s1336_s6 = int_to_ptr.vmem [resolvable:$false] %s1335_s6 }
  0x13   : > { %s1337_s8 = scalar_lea.vmem (!%p167_p9), %s1336_s6, 32  ;;  %p1338_p0 = scmp.lt.s32.totalorder (!%p167_p9), %s1765_s22, %s1336_s6 }
  0x14   : > { %p1333_p12 = pnand (!%p167_p9), %p1332_p11, %p1456_p5  ;;  %p1339_p1 = scmp.lt.s32.totalorder (!%p167_p9), %s1337_s8, %s1331_s30 }
  0x15   : > { %s193_s10 = scalar_select %p192_p10, %s1475_s7, 63  ;;  %1131 = vmatpush3.bf16.msra.mxu0 %v1128_v5 }
  0x16   : > { %p1334_p13 = pneg %p1333_p12  ;;  %p1340_p2 = por %p1339_p1, %p1338_p0 }
  0x17   : > { %s915_s11 = sshll.u32 %s193_s10, 3 }
  0x18   : > { %s1485_s14 = scalar_lea.vmem %s1805_s0, %s915_s11  ;;  %p1341_p3 = pnand %p1340_p2, %p1334_p13 }
  0x19   : > { %v197_v6 = vld [vmem:[%s1485_s14] sm:$0xff]  ;;  %v198_v7 = vld [vmem:[%s1485_s14 + $0x8] sm:$0xff]  ;;  %v199_v8 = vld [vmem:[%s1485_s14 + $0x10] sm:$0xff] }
  0x1a   : > { %1044 = vmatprep.mubr.msk.f32.mxu0 %vm224_vm0, %v197_v6  ;;  %v200_v9 = vld [vmem:[%s1485_s14 + $0x18] sm:$0xff]  ;;  %v201_v10 = vld [vmem:[%s1485_s14 + $0x20] sm:$0xff]  ;;  %v202_v11 = vld [vmem:[%s1485_s14 + $0x28] sm:$0xff] }
  0x1b   : > { %1045 = vmatmul.mubr.msk.f32.vlgmr.msra.gmra.mrb[0].mxu0 %vm224_vm0, %v198_v7  ;;  %v203_v12 = vld [vmem:[%s1485_s14 + $0x30] sm:$0xff]  ;;  %v204_v13 = vld [vmem:[%s1485_s14 + $0x38] sm:$0xff]  ;;  %v205_v14 = vld [vmem:[%s1485_s14 + $0x40] sm:$0xff] }
  0x1c   : > { %1047 = vmatprep.mubr.msk.f32.mxu0 %vm224_vm0, %v199_v8  ;;  %v206_v15 = vld [vmem:[%s1485_s14 + $0x48] sm:$0xff]  ;;  %v207_v16 = vld [vmem:[%s1485_s14 + $0x50] sm:$0xff]  ;;  %v208_v17 = vld [vmem:[%s1485_s14 + $0x58] sm:$0xff] }
  0x1d   : > { %v209_v18 = vld [vmem:[%s1485_s14 + $0x60] sm:$0xff]  ;;  %v210_v19 = vld [vmem:[%s1485_s14 + $0x68] sm:$0xff]  ;;  %v211_v20 = vld [vmem:[%s1485_s14 + $0x70] sm:$0xff] }
  0x1e   : > { %v212_v21 = vld [vmem:[%s1485_s14 + $0x78] sm:$0xff] }
  0x1f   : > { %1048 = vmatmul.mubr.msk.f32.gmra.mrb[2].mxu0 %vm224_vm0, %v200_v9 }
  0x20   : > { %1050 = vmatprep.mubr.msk.f32.mxu0 %vm224_vm0, %v201_v10 }
  0x23   : > { %1051 = vmatmul.mubr.msk.f32.gmra.mrb[4].mxu0 %vm224_vm0, %v202_v11 }
  0x24   : > { %1053 = vmatprep.mubr.msk.f32.mxu0 %vm224_vm0, %v203_v12 }
  0x27   : > { %1054 = vmatmul.mubr.msk.f32.gmra.mrb[6].mxu0 %vm224_vm0, %v204_v13 }
  0x28   : > { %1056 = vmatprep.mubr.msk.f32.mxu0 %vm224_vm0, %v205_v14 }
  0x2b   : > { %1057 = vmatmul.mubr.msk.f32.gmra.mrb[8].mxu0 %vm224_vm0, %v206_v15 }
  0x2c   : > { %1059 = vmatprep.mubr.msk.f32.mxu0 %vm224_vm0, %v207_v16 }
  0x2f   : > { %1060 = vmatmul.mubr.msk.f32.gmra.mrb[10].mxu0 %vm224_vm0, %v208_v17 }
  0x30   : > { %1062 = vmatprep.mubr.msk.f32.mxu0 %vm224_vm0, %v209_v18 }
  0x33   : > { %1063 = vmatmul.mubr.msk.f32.gmra.mrb[12].mxu0 %vm224_vm0, %v210_v19 }
  0x34   : > { %1065 = vmatprep.mubr.msk.f32.mxu0 %vm224_vm0, %v211_v20 }
  0x37   : > { %1066 = vmatmul.mubr.msk.f32.gmra.mrb[14].mxu0 %vm224_vm0, %v212_v21 }
  0xee   : > { %v1046_v23 = vpop.f32.mrb[0].mxu0 }
  0xef   : > { %v345_v24 = vadd.f32 %v1046_v23, %v1522_v22  ;;  %v339_v25 = vpop.f32.mrb[1].mxu0 }
  0xf0   : > { %v340_v26 = vadd.f32 %v1522_v22, %v339_v25 }
  0xf1   : > { %1235 = vtanh.f32 %v345_v24 }
  0xf2   : > { %1237 = vtanh.f32 %v340_v26  ;;  %v1049_v27 = vpop.f32.mrb[2].mxu0 }
  0xf3   : > { %v355_v28 = vadd.f32 %v1049_v27, %v1522_v22  ;;  %v349_v29 = vpop.f32.mrb[3].mxu0 }
  0xf4   : > { %v350_v30 = vadd.f32 %v1522_v22, %v349_v29 }
  0xf5   : > { %1239 = vtanh.f32 %v355_v28 }
  0xf6   : > { %1241 = vtanh.f32 %v350_v30  ;;  %v1052_v31 = vpop.f32.mrb[4].mxu0 }
  0xf7   : > { %v365_v32 = vadd.f32 %v1052_v31, %v1522_v22  ;;  %v359_v33 = vpop.f32.mrb[5].mxu0 }
  0xf8   : > { %v360_v34 = vadd.f32 %v1522_v22, %v359_v33 }
  0xf9   : > { %1243 = vtanh.f32 %v365_v32 }
  0xfa   : > { %1245 = vtanh.f32 %v360_v34  ;;  %v1055_v35 = vpop.f32.mrb[6].mxu0 }
  0xfb   : > { %v1530_v36 = vpop.eup %1235  ;;  %v375_v37 = vadd.f32 %v1055_v35, %v1522_v22  ;;  %v369_v38 = vpop.f32.mrb[7].mxu0 }
  0xfc   : > { %v1238_v39 = vpop.eup %1237  ;;  %v370_v41 = vadd.f32 %v1522_v22, %v369_v38 }
  0xfd   : > { %1100 = vmatprep.mubr.msk.f32.mxu0 %vm224_vm0, %v1238_v39  ;;  %v1132_v42 = vpack.c.bf16 %v1530_v36, %v1238_v39  ;;  %1247 = vtanh.f32 %v375_v37 }
  0xfe   : > { %1249 = vtanh.f32 %v370_v41  ;;  %v1058_v43 = vpop.f32.mrb[8].mxu0 }
  0xff   : > { %v1542_v44 = vpop.eup %1239  ;;  %1134 = vmatprep.subr.msk.bf16.mxu0 %vm1535_vm1, %v1132_v42  ;;  %1180 = vmatprep.subr.msk.bf16.mxu1 %vm1535_vm1, %v1132_v42  ;;  %v385_v45 = vadd.f32 %v1058_v43, %v1522_v22  ;;  %v379_v46 = vpop.f32.mrb[9].mxu0 }
 0x100   : > { %v1549_v47 = vpop.eup %1241  ;;  %1137 = vmatpush3.bf16.xpose.msk.msra.mxu0 %vm1535_vm1, %v1132_v42  ;;  %1188 = vmatpush3.bf16.xpose.msk.msra.mxu1 %vm1535_vm1, %v1132_v42  ;;  %v380_v48 = vadd.f32 %v1522_v22, %v379_v46  ;;  %v675_v46 = vld [vmem:[%s1808_s3] sm:$0xff] }
 0x101   : > { %v1138_v49 = vpack.c.bf16 %v1542_v44, %v1549_v47  ;;  %1251 = vtanh.f32 %v385_v45 }
 0x102   : > { %1253 = vtanh.f32 %v380_v48  ;;  %v1061_v50 = vpop.f32.mrb[10].mxu0 }
 0x103   : > { %v1558_v51 = vpop.eup %1243  ;;  %1140 = vmatprep.subr.msk.bf16.mxu0 %vm1535_vm1, %v1138_v49  ;;  %1181 = vmatprep.subr.msk.bf16.mxu1 %vm1535_vm1, %v1138_v49  ;;  %v395_v52 = vadd.f32 %v1061_v50, %v1522_v22  ;;  %v389_v53 = vpop.f32.mrb[11].mxu0 }
 0x104   : > { %v1565_v54 = vpop.eup %1245  ;;  %v390_v55 = vadd.f32 %v1522_v22, %v389_v53 }
 0x105   : > { %v1144_v56 = vpack.c.bf16 %v1558_v51, %v1565_v54  ;;  %1255 = vtanh.f32 %v395_v52 }
 0x106   : > { %1257 = vtanh.f32 %v390_v55  ;;  %v1064_v57 = vpop.f32.mrb[12].mxu0 }
 0x107   : > { %v1248_v58 = vpop.eup %1247  ;;  %v405_v59 = vadd.f32 %v1064_v57, %v1522_v22  ;;  %v399_v60 = vpop.f32.mrb[13].mxu0  ;;  %v677_v57 = vld [vmem:[%s1808_s3 + $0x10] sm:$0xff] }
 0x108   : > { %v1250_v61 = vpop.eup %1249  ;;  %1143 = vmatpush3.bf16.xpose.msk.msra.mxu0 %vm1535_vm1, %v1138_v49  ;;  %1189 = vmatpush3.bf16.xpose.msk.msra.mxu1 %vm1535_vm1, %v1138_v49  ;;  %v400_v62 = vadd.f32 %v1522_v22, %v399_v60 }
 0x109   : > { %1146 = vmatprep.subr.msk.bf16.mxu0 %vm1535_vm1, %v1144_v56  ;;  %1182 = vmatprep.subr.msk.bf16.mxu1 %vm1535_vm1, %v1144_v56  ;;  %v1150_v63 = vpack.c.bf16 %v1248_v58, %v1250_v61  ;;  %1259 = vtanh.f32 %v405_v59 }
 0x10a   : > { %1109 = vmatprep.mubr.msk.f32.mxu1 %vm224_vm0, %v1250_v61  ;;  %1261 = vtanh.f32 %v400_v62  ;;  %v1067_v0 = vpop.f32.mrb[14].mxu0 }
 0x10b   : > { %v1252_v1 = vpop.eup %1251  ;;  %v415_v2 = vadd.f32 %v1067_v0, %v1522_v22  ;;  %v409_v3 = vpop.f32.mrb[15].mxu0 }
 0x10c   : > { %v1254_v4 = vpop.eup %1253  ;;  %v410_v5 = vadd.f32 %v1522_v22, %v409_v3  ;;  %v679_v3 = vld [vmem:[%s1808_s3 + $0x20] sm:$0xff] }
 0x10d   : > { %v1156_v6 = vpack.c.bf16 %v1252_v1, %v1254_v4  ;;  %1263 = vtanh.f32 %v415_v2  ;;  %v678_v2 = vld [vmem:[%s1808_s3 + $0x18] sm:$0xff] }
 0x10e   : > { %1265 = vtanh.f32 %v410_v5 }
 0x10f   : > { %v1256_v7 = vpop.eup %1255 }
 0x110   : > { %v1258_v8 = vpop.eup %1257  ;;  %1149 = vmatpush3.bf16.xpose.msk.msra.mxu0 %vm1535_vm1, %v1144_v56  ;;  %1190 = vmatpush3.bf16.xpose.msk.msra.mxu1 %vm1535_vm1, %v1144_v56  ;;  %v676_v56 = vld [vmem:[%s1808_s3 + $0x8] sm:$0xff] }
 0x111   : > { %1152 = vmatprep.subr.msk.bf16.mxu0 %vm1535_vm1, %v1150_v63  ;;  %1183 = vmatprep.subr.msk.bf16.mxu1 %vm1535_vm1, %v1150_v63  ;;  %v1162_v9 = vpack.c.bf16 %v1256_v7, %v1258_v8 }
 0x113   : > { %v1260_v10 = vpop.eup %1259 }
 0x114   : > { %v1262_v11 = vpop.eup %1261 }
 0x115   : > { %v1168_v12 = vpack.c.bf16 %v1260_v10, %v1262_v11 }
 0x117   : > { %v1264_v13 = vpop.eup %1263 }
 0x118   : > { %v1266_v14 = vpop.eup %1265  ;;  %1155 = vmatpush3.bf16.xpose.msk.msra.mxu0 %vm1535_vm1, %v1150_v63  ;;  %1191 = vmatpush3.bf16.xpose.msk.msra.mxu1 %vm1535_vm1, %v1150_v63 }
 0x119   : > { %1158 = vmatprep.subr.msk.bf16.mxu0 %vm1535_vm1, %v1156_v6  ;;  %1184 = vmatprep.subr.msk.bf16.mxu1 %vm1535_vm1, %v1156_v6  ;;  %v1174_v15 = vpack.c.bf16 %v1264_v13, %v1266_v14 }
 0x120   : > { %1161 = vmatpush3.bf16.xpose.msk.msra.mxu0 %vm1535_vm1, %v1156_v6  ;;  %1192 = vmatpush3.bf16.xpose.msk.msra.mxu1 %vm1535_vm1, %v1156_v6 }
 0x121   : > { %1164 = vmatprep.subr.msk.bf16.mxu0 %vm1535_vm1, %v1162_v9  ;;  %1185 = vmatprep.subr.msk.bf16.mxu1 %vm1535_vm1, %v1162_v9 }
 0x128   : > { %1167 = vmatpush3.bf16.xpose.msk.msra.mxu0 %vm1535_vm1, %v1162_v9  ;;  %1193 = vmatpush3.bf16.xpose.msk.msra.mxu1 %vm1535_vm1, %v1162_v9 }
 0x129   : > { %1170 = vmatprep.subr.msk.bf16.mxu0 %vm1535_vm1, %v1168_v12  ;;  %1186 = vmatprep.subr.msk.bf16.mxu1 %vm1535_vm1, %v1168_v12 }
 0x130   : > { %1173 = vmatpush3.bf16.xpose.msk.msra.mxu0 %vm1535_vm1, %v1168_v12  ;;  %1194 = vmatpush3.bf16.xpose.msk.msra.mxu1 %vm1535_vm1, %v1168_v12 }
 0x131   : > { %1176 = vmatprep.subr.msk.bf16.mxu0 %vm1535_vm1, %v1174_v15  ;;  %1187 = vmatprep.subr.msk.bf16.mxu1 %vm1535_vm1, %v1174_v15 }
 0x138   : > { %1179 = vmatpush3.bf16.xpose.msk.msra.mxu0 %vm1535_vm1, %v1174_v15  ;;  %1195 = vmatpush3.bf16.xpose.msk.msra.mxu1 %vm1535_vm1, %v1174_v15 }
 0x13f   : > { %1101 = vmatmul.mubr.msk.f32.vlgmr.msra.gmra.mrb[16].mxu0 %vm224_vm0, %v1530_v36  ;;  %1110 = vmatmul.mubr.msk.f32.vlgmr.msra.gmra.mrb[0].mxu1 %vm224_vm0, %v1248_v58 }
 0x140   : > { %1103 = vmatprep.mubr.msk.f32.mxu0 %vm224_vm0, %v1549_v47  ;;  %1112 = vmatprep.mubr.msk.f32.mxu1 %vm224_vm0, %v1254_v4 }
 0x143   : > { %1104 = vmatmul.mubr.msk.f32.gmra.mrb[18].mxu0 %vm224_vm0, %v1542_v44  ;;  %1113 = vmatmul.mubr.msk.f32.gmra.mrb[2].mxu1 %vm224_vm0, %v1252_v1 }
 0x144   : > { %1106 = vmatprep.mubr.msk.f32.mxu0 %vm224_vm0, %v1565_v54  ;;  %1115 = vmatprep.mubr.msk.f32.mxu1 %vm224_vm0, %v1258_v8 }
 0x147   : > { %1107 = vmatmul.mubr.msk.f32.gmra.mrb[20].mxu0 %vm224_vm0, %v1558_v51  ;;  %1116 = vmatmul.mubr.msk.f32.gmra.mrb[4].mxu1 %vm224_vm0, %v1256_v7 }
 0x148   : > { %1118 = vmatprep.mubr.msk.f32.mxu1 %vm224_vm0, %v1262_v11 }
 0x14b   : > { %1119 = vmatmul.mubr.msk.f32.gmra.mrb[6].mxu1 %vm224_vm0, %v1260_v10 }
 0x14c   : > { %1121 = vmatprep.mubr.msk.f32.mxu1 %vm224_vm0, %v1266_v14  ;;  %v681_v14 = vld [vmem:[%s1808_s3 + $0x30] sm:$0xff] }
 0x14f   : > { %1122 = vmatmul.mubr.msk.f32.gmra.mrb[8].mxu1 %vm224_vm0, %v1264_v13  ;;  %v680_v13 = vld [vmem:[%s1808_s3 + $0x28] sm:$0xff] }
 0x212   : > { %v1102_v16 = vpop.f32.mrb[16].mxu0  ;;  %v1111_v17 = vpop.f32.mrb[0].mxu1 }
 0x213   : > { %v966_v18 = vadd.f32 -32.0, %v1102_v16  ;;  %v548_v19 = vpop.f32.mrb[17].mxu0  ;;  %v578_v20 = vpop.f32.mrb[1].mxu1  ;;  %v972_v39 = vadd.f32 -32.0, %v1111_v17 }
 0x214   : > { %v965_v21 = vadd.f32 -32.0, %v548_v19  ;;  %v971_v30 = vadd.f32 -32.0, %v578_v20 }
 0x215   : > { %v645_v25 = vmul.f32 1.442695, %v966_v18  ;;  %v657_v47 = vmul.f32 1.442695, %v972_v39 }
 0x216   : > { %v643_v22 = vmul.f32 1.442695, %v965_v21  ;;  %v1105_v23 = vpop.f32.mrb[18].mxu0  ;;  %v1114_v24 = vpop.f32.mrb[2].mxu1  ;;  %v655_v40 = vmul.f32 1.442695, %v971_v30 }
 0x217   : > { %v968_v26 = vadd.f32 -32.0, %v1105_v23  ;;  %v558_v27 = vpop.f32.mrb[19].mxu0  ;;  %v588_v28 = vpop.f32.mrb[3].mxu1  ;;  %v974_v48 = vadd.f32 -32.0, %v1114_v24  ;;  %v683_v23 = vld [vmem:[%s1808_s3 + $0x40] sm:$0xff]  ;;  %v685_v30 = vld [vmem:[%s1808_s3 + $0x50] sm:$0xff] }
 0x218   : > { %v967_v29 = vadd.f32 -32.0, %v558_v27  ;;  %1267 = vpow2.f32 %v643_v22  ;;  %v973_v43 = vadd.f32 -32.0, %v588_v28  ;;  %v682_v22 = vld [vmem:[%s1808_s3 + $0x38] sm:$0xff] }
 0x219   : > { %1269 = vpow2.f32 %v645_v25  ;;  %v649_v34 = vmul.f32 1.442695, %v968_v26  ;;  %v661_v58 = vmul.f32 1.442695, %v974_v48 }
 0x21a   : > { %v647_v31 = vmul.f32 1.442695, %v967_v29  ;;  %v1108_v32 = vpop.f32.mrb[20].mxu0  ;;  %v1117_v33 = vpop.f32.mrb[4].mxu1  ;;  %v659_v51 = vmul.f32 1.442695, %v973_v43 }
 0x21b   : > { %v970_v35 = vadd.f32 -32.0, %v1108_v32  ;;  %v568_v36 = vpop.f32.mrb[21].mxu0  ;;  %v598_v37 = vpop.f32.mrb[5].mxu1  ;;  %v976_v59 = vadd.f32 -32.0, %v1117_v33  ;;  %v684_v29 = vld [vmem:[%s1808_s3 + $0x48] sm:$0xff] }
 0x21c   : > { %v969_v38 = vadd.f32 -32.0, %v568_v36  ;;  %1271 = vpow2.f32 %v647_v31  ;;  %v975_v52 = vadd.f32 -32.0, %v598_v37  ;;  %v687_v36 = vld [vmem:[%s1808_s3 + $0x60] sm:$0xff] }
 0x21d   : > { %1273 = vpow2.f32 %v649_v34  ;;  %v653_v44 = vmul.f32 1.442695, %v970_v35  ;;  %v665_v4 = vmul.f32 1.442695, %v976_v59  ;;  %v686_v35 = vld [vmem:[%s1808_s3 + $0x58] sm:$0xff] }
 0x21e   : > { %v651_v41 = vmul.f32 1.442695, %v969_v38  ;;  %v1120_v42 = vpop.f32.mrb[6].mxu1  ;;  %v663_v61 = vmul.f32 1.442695, %v975_v52 }
 0x21f   : > { %v608_v45 = vpop.f32.mrb[7].mxu1  ;;  %v978_v5 = vadd.f32 -32.0, %v1120_v42  ;;  %v689_v42 = vld [vmem:[%s1808_s3 + $0x70] sm:$0xff] }
 0x220   : > { %1275 = vpow2.f32 %v651_v41  ;;  %v977_v62 = vadd.f32 -32.0, %v608_v45  ;;  %v688_v41 = vld [vmem:[%s1808_s3 + $0x68] sm:$0xff] }
 0x221   : > { %1277 = vpow2.f32 %v655_v40  ;;  %v669_v15 = vmul.f32 1.442695, %v978_v5 }
 0x222   : > { %v1123_v49 = vpop.f32.mrb[8].mxu1  ;;  %v1268_v50 = vpop.eup %1267  ;;  %1279 = vpow2.f32 %v653_v44  ;;  %v667_v7 = vmul.f32 1.442695, %v977_v62 }
 0x223   : > { %v618_v53 = vpop.f32.mrb[9].mxu1  ;;  %v1649_v54 = vmul.f32 %v1268_v50, %v675_v46  ;;  %v1270_v55 = vpop.eup %1269  ;;  %1281 = vpow2.f32 %v657_v47  ;;  %v980_v16 = vadd.f32 -32.0, %v1123_v49  ;;  %v690_v46 = vld [vmem:[%s1808_s3 + $0x78] sm:$0xff] }
 0x224   : > { %1283 = vpow2.f32 %v659_v51  ;;  %v1658_v63 = vmul.f32 %v1270_v55, %v676_v56  ;;  %v979_v8 = vadd.f32 -32.0, %v618_v53 }
 0x225   : > { %707 = vadd.xlane.f32.xlu0 %v1649_v54  ;;  %1285 = vpow2.f32 %v661_v58  ;;  %v673_v24 = vmul.f32 1.442695, %v980_v16 }
 0x226   : > { %v1272_v60 = vpop.eup %1271  ;;  %1287 = vpow2.f32 %v663_v61  ;;  %v671_v17 = vmul.f32 1.442695, %v979_v8 }
 0x227   : > { %v1660_v0 = vmul.f32 %v1272_v60, %v677_v57  ;;  %v1274_v1 = vpop.eup %1273  ;;  %1289 = vpow2.f32 %v665_v4 }
 0x228   : > { %v1670_v10 = vmul.f32 %v1274_v1, %v678_v2  ;;  %1291 = vpow2.f32 %v667_v7 }
 0x229   : > { %709 = vadd.xlane.f32.xlu0 %v1658_v63  ;;  %711 = vadd.xlane.f32.xlu1 %v1660_v0  ;;  %1293 = vpow2.f32 %v669_v15 }
 0x22a   : > { %v1276_v6 = vpop.eup %1275  ;;  %1295 = vpow2.f32 %v671_v17 }
 0x22b   : > { %v1278_v9 = vpop.eup %1277  ;;  %v1672_v11 = vmul.f32 %v1276_v6, %v679_v3  ;;  %1297 = vpow2.f32 %v673_v24 }
 0x22c   : > { %v1280_v12 = vpop.eup %1279  ;;  %v1684_v20 = vmul.f32 %v1278_v9, %v681_v14 }
 0x22d   : > { %713 = vadd.xlane.f32.xlu1 %v1670_v10  ;;  %715 = vadd.xlane.f32.xlu0 %v1672_v11  ;;  %v1282_v18 = vpop.eup %1281  ;;  %v1682_v19 = vmul.f32 %v1280_v12, %v680_v13 }
 0x22e   : > { %v1284_v21 = vpop.eup %1283  ;;  %v1694_v26 = vmul.f32 %v1282_v18, %v682_v22 }
 0x22f   : > { %v1286_v25 = vpop.eup %1285  ;;  %v1696_v27 = vmul.f32 %v1284_v21, %v683_v23 }
 0x230   : > { %v1288_v28 = vpop.eup %1287  ;;  %v1706_v32 = vmul.f32 %v1286_v25, %v684_v29 }
 0x231   : > { %717 = vadd.xlane.f32.xlu1 %v1682_v19  ;;  %719 = vadd.xlane.f32.xlu0 %v1684_v20  ;;  %v1290_v31 = vpop.eup %1289  ;;  %v1708_v33 = vmul.f32 %v1288_v28, %v685_v30 }
 0x232   : > { %v1292_v34 = vpop.eup %1291  ;;  %v1718_v38 = vmul.f32 %v1290_v31, %v686_v35 }
 0x233   : > { %v1294_v37 = vpop.eup %1293  ;;  %v1720_v39 = vmul.f32 %v1292_v34, %v687_v36 }
 0x234   : > { %v1296_v40 = vpop.eup %1295  ;;  %v1730_v43 = vmul.f32 %v1294_v37, %v688_v41 }
 0x235   : > { %721 = vadd.xlane.f32.xlu1 %v1694_v26  ;;  %723 = vadd.xlane.f32.xlu0 %v1696_v27  ;;  %v1732_v44 = vmul.f32 %v1296_v40, %v689_v42  ;;  %v1298_v45 = vpop.eup %1297 }
 0x236   : > { %v1739_v47 = vmul.f32 %v1298_v45, %v690_v46 }
 0x239   : > { %725 = vadd.xlane.f32.xlu1 %v1706_v32  ;;  %727 = vadd.xlane.f32.xlu0 %v1708_v33 }
 0x23d   : > { %729 = vadd.xlane.f32.xlu1 %v1718_v38  ;;  %731 = vadd.xlane.f32.xlu0 %v1720_v39 }
 0x241   : > { %733 = vadd.xlane.f32.xlu1 %v1730_v43  ;;  %735 = vadd.xlane.f32.xlu0 %v1732_v44 }
 0x245   : > { %737 = vadd.xlane.f32.xlu1 %v1739_v47 }
 0x2b2   : > { %v708_v48 = vpop.xlane.xlu0 %707 }
 0x2b3   : > { %1299 = vrcp.f32 %v708_v48 }
 0x2b6   : > { %v710_v49 = vpop.xlane.xlu0 %709  ;;  %v712_v50 = vpop.xlane.xlu1 %711 }
 0x2b7   : > { %1301 = vrcp.f32 %v710_v49 }
 0x2b8   : > { %1303 = vrcp.f32 %v712_v50 }
 0x2ba   : > { %v714_v51 = vpop.xlane.xlu1 %713  ;;  %v716_v52 = vpop.xlane.xlu0 %715 }
 0x2bb   : > { %1305 = vrcp.f32 %v714_v51 }
 0x2bc   : > { %1307 = vrcp.f32 %v716_v52 }
 0x2bd   : > { %v1300_v53 = vpop.eup %1299 }
 0x2be   : > { %v755_v55 = vmul.f32 %v1300_v53, %v708_v48  ;;  %v718_v56 = vpop.xlane.xlu1 %717  ;;  %v720_v57 = vpop.xlane.xlu0 %719 }
 0x2bf   : > { %1309 = vrcp.f32 %v718_v56 }
 0x2c0   : > { %v771_v58 = vsub.f32 2.0, %v755_v55  ;;  %1311 = vrcp.f32 %v720_v57 }
 0x2c1   : > { %v1302_v59 = vpop.eup %1301 }
 0x2c2   : > { %v1304_v60 = vpop.eup %1303  ;;  %v756_v61 = vmul.f32 %v1302_v59, %v710_v49  ;;  %v722_v62 = vpop.xlane.xlu1 %721  ;;  %v787_v3 = vmul.f32 %v1300_v53, %v771_v58 }
 0x2c3   : > { %v724_v1 = vpop.xlane.xlu0 %723  ;;  %v757_v2 = vmul.f32 %v1304_v60, %v712_v50  ;;  %1313 = vrcp.f32 %v722_v62 }
 0x2c4   : > { %v772_v4 = vsub.f32 2.0, %v756_v61  ;;  %1315 = vrcp.f32 %v724_v1  ;;  %v803_v16 = vmul.f32 %v787_v3, %v1649_v54 }
 0x2c5   : > { %v1306_v5 = vpop.eup %1305  ;;  %v773_v6 = vsub.f32 2.0, %v757_v2 }
 0x2c6   : > { %v1308_v7 = vpop.eup %1307  ;;  %v788_v8 = vmul.f32 %v1302_v59, %v772_v4  ;;  %v758_v9 = vmul.f32 %v1306_v5, %v714_v51  ;;  %v726_v12 = vpop.xlane.xlu1 %725 }
 0x2c7   : > { %v728_v13 = vpop.xlane.xlu0 %727  ;;  %v789_v14 = vmul.f32 %v1304_v60, %v773_v6  ;;  %v759_v15 = vmul.f32 %v1308_v7, %v716_v52  ;;  %1317 = vrcp.f32 %v726_v12 }
 0x2c8   : > { %v804_v17 = vmul.f32 %v788_v8, %v1658_v63  ;;  %v774_v18 = vsub.f32 2.0, %v758_v9  ;;  %1319 = vrcp.f32 %v728_v13 }
 0x2c9   : > { %v1310_v21 = vpop.eup %1309  ;;  %v775_v22 = vsub.f32 2.0, %v759_v15  ;;  %v805_v25 = vmul.f32 %v789_v14, %v1660_v0 }
 0x2ca   : > { %v1312_v23 = vpop.eup %1311  ;;  %v819_v24 = vadd.f32 %v804_v17, %v803_v16  ;;  %v790_v28 = vmul.f32 %v1306_v5, %v774_v18  ;;  %v760_v29 = vmul.f32 %v1310_v21, %v718_v56  ;;  %v730_v30 = vpop.xlane.xlu1 %729 }
 0x2cb   : > { %v732_v31 = vpop.xlane.xlu0 %731  ;;  %v791_v34 = vmul.f32 %v1308_v7, %v775_v22  ;;  %v761_v35 = vmul.f32 %v1312_v23, %v720_v57  ;;  %1321 = vrcp.f32 %v730_v30 }
 0x2cc   : > { %v820_v36 = vadd.f32 %v819_v24, %v805_v25  ;;  %v806_v54 = vmul.f32 %v790_v28, %v1670_v10  ;;  %v776_v37 = vsub.f32 2.0, %v760_v29  ;;  %1323 = vrcp.f32 %v732_v31 }
 0x2cd   : > { %v1314_v63 = vpop.eup %1313  ;;  %v777_v40 = vsub.f32 2.0, %v761_v35  ;;  %v807_v45 = vmul.f32 %v791_v34, %v1672_v11 }
 0x2ce   : > { %v1316_v41 = vpop.eup %1315  ;;  %v821_v42 = vadd.f32 %v820_v36, %v806_v54  ;;  %v792_v46 = vmul.f32 %v1310_v21, %v776_v37  ;;  %v762_v0 = vmul.f32 %v1314_v63, %v722_v62  ;;  %v734_v48 = vpop.xlane.xlu1 %733 }
 0x2cf   : > { %v736_v49 = vpop.xlane.xlu0 %735  ;;  %v793_v50 = vmul.f32 %v1312_v23, %v777_v40  ;;  %v763_v51 = vmul.f32 %v1316_v41, %v724_v1  ;;  %1325 = vrcp.f32 %v734_v48 }
 0x2d0   : > { %v822_v52 = vadd.f32 %v821_v42, %v807_v45  ;;  %v808_v53 = vmul.f32 %v792_v46, %v1682_v19  ;;  %v778_v55 = vsub.f32 2.0, %v762_v0  ;;  %1327 = vrcp.f32 %v736_v49 }
 0x2d1   : > { %v1318_v10 = vpop.eup %1317  ;;  %v779_v56 = vsub.f32 2.0, %v763_v51  ;;  %v809_v59 = vmul.f32 %v793_v50, %v1684_v20 }
 0x2d2   : > { %v1320_v57 = vpop.eup %1319  ;;  %v823_v58 = vadd.f32 %v822_v52, %v808_v53  ;;  %v794_v60 = vmul.f32 %v1314_v63, %v778_v55  ;;  %v764_v11 = vmul.f32 %v1318_v10, %v726_v12  ;;  %v738_v61 = vpop.xlane.xlu1 %737 }
 0x2d3   : > { %v795_v62 = vmul.f32 %v1316_v41, %v779_v56  ;;  %v765_v2 = vmul.f32 %v1320_v57, %v728_v13  ;;  %1329 = vrcp.f32 %v738_v61 }
 0x2d4   : > { %v824_v3 = vadd.f32 %v823_v58, %v809_v59  ;;  %v810_v1 = vmul.f32 %v794_v60, %v1694_v26  ;;  %v780_v4 = vsub.f32 2.0, %v764_v11 }
 0x2d5   : > { %v1322_v5 = vpop.eup %1321  ;;  %v781_v19 = vsub.f32 2.0, %v765_v2  ;;  %v811_v8 = vmul.f32 %v795_v62, %v1696_v27 }
 0x2d6   : > { %v1324_v6 = vpop.eup %1323  ;;  %v825_v7 = vadd.f32 %v824_v3, %v810_v1  ;;  %v796_v9 = vmul.f32 %v1318_v10, %v780_v4  ;;  %v766_v14 = vmul.f32 %v1322_v5, %v730_v30 }
 0x2d7   : > { %v797_v15 = vmul.f32 %v1320_v57, %v781_v19  ;;  %v767_v20 = vmul.f32 %v1324_v6, %v732_v31 }
 0x2d8   : > { %v826_v16 = vadd.f32 %v825_v7, %v811_v8  ;;  %v812_v12 = vmul.f32 %v796_v9, %v1706_v32  ;;  %v782_v17 = vsub.f32 2.0, %v766_v14 }
 0x2d9   : > { %v1326_v13 = vpop.eup %1325  ;;  %v783_v18 = vsub.f32 2.0, %v767_v20  ;;  %v813_v26 = vmul.f32 %v797_v15, %v1708_v33 }
 0x2da   : > { %v1328_v21 = vpop.eup %1327  ;;  %v827_v22 = vadd.f32 %v826_v16, %v812_v12  ;;  %v798_v23 = vmul.f32 %v1322_v5, %v782_v17  ;;  %v768_v24 = vmul.f32 %v1326_v13, %v734_v48 }
 0x2db   : > { %v799_v25 = vmul.f32 %v1324_v6, %v783_v18  ;;  %v769_v28 = vmul.f32 %v1328_v21, %v736_v49 }
 0x2dc   : > { %v828_v29 = vadd.f32 %v827_v22, %v813_v26  ;;  %v814_v27 = vmul.f32 %v798_v23, %v1718_v38  ;;  %v784_v30 = vsub.f32 2.0, %v768_v24 }
 0x2dd   : > { %v1330_v34 = vpop.eup %1329  ;;  %v785_v31 = vsub.f32 2.0, %v769_v28  ;;  %v815_v32 = vmul.f32 %v799_v25, %v1720_v39 }
 0x2de   : > { %v829_v35 = vadd.f32 %v828_v29, %v814_v27  ;;  %v800_v36 = vmul.f32 %v1326_v13, %v784_v30  ;;  %v770_v54 = vmul.f32 %v1330_v34, %v738_v61 }
 0x2df   : > { %v801_v37 = vmul.f32 %v1328_v21, %v785_v31 }
 0x2e0   : > { %v830_v63 = vadd.f32 %v829_v35, %v815_v32  ;;  %v816_v33 = vmul.f32 %v800_v36, %v1730_v43  ;;  %v786_v40 = vsub.f32 2.0, %v770_v54 }
 0x2e1   : > { %v817_v42 = vmul.f32 %v801_v37, %v1732_v44 }
 0x2e2   : > { %v831_v41 = vadd.f32 %v830_v63, %v816_v33  ;;  %v802_v45 = vmul.f32 %v1330_v34, %v786_v40 }
 0x2e4   : > { %v832_v38 = vadd.f32 %v831_v41, %v817_v42  ;;  %v818_v46 = vmul.f32 %v802_v45, %v1739_v47 }
 0x2e6   : > { %v833_v0 = vadd.f32 %v832_v38, %v818_v46 }
 0x2e8   : > { %v834_v48 = vrot.slane %v833_v0, 4 }
 0x2ea   : > { %v835_v49 = vadd.f32 %v834_v48, %v833_v0 }
 0x2ec   : > { %v836_v39 = vrot.slane %v835_v49, 2 }
 0x2ee   : > { %v837_v50 = vadd.f32 %v836_v39, %v835_v49 }
 0x2f0   : > { %v838_v51 = vrot.slane %v837_v50, 1 }
 0x2f2   : > { %v839_v43 = vadd.f32 %v838_v51, %v837_v50 }
 0x2f4   : > { %v840_v52 = vmul.f32 0.125, %v839_v43 }
 0x2f6   : > { %841 = vst [vmem:[%s190_s20] sm:$0x1] %v840_v52 }
 0x2f7   : > { %1344 = shalt.err (!%p1341_p3)
}
 0x2f8   : > { %s1345_s7 = scalar_lea.hbm %s1763_s28, 16  ;;  %s1349_s11 = scalar_lea.hbm %s1809_s4, 64 }
 0x2f9   : > { %p1346_p4 = scmp.ne.s32.totalorder %s1763_s28, %s1345_s7  ;;  %p1350_p9 = scmp.lt.u32.totalorder %s1763_s28, %s1809_s4 }
 0x2fa   : > { %p1351_p10 = scmp.lt.u32.totalorder %s1349_s11, %s1345_s7  ;;  %p1353_p12 = scmp.lt.u32.totalorder %s1345_s7, %s1763_s28 }
 0x2fb   : > { %p1347_p7 = pnand %p1346_p4, %p1456_p5 }
 0x2fc   : > { %p1352_p11 = por %p1351_p10, %p1350_p9 }
 0x2fd   : > { %p1348_p8 = pneg %p1347_p7 }
 0x2fe   : > { %p1354_p13 = por %p1353_p12, %p1352_p11 }
 0x300   : > { %p1355_p0 = pnand %p1354_p13, %p1348_p8 }
 0x302   : > { %1358 = shalt.err (!%p1355_p0)
}
 0x303   : > { %1196 = dma.vmem_to_hbm [thread:$0]  (%p1456_p5), %s1765_s22, 16, %s1763_s28, %s843_s29  }
 0x304 PF: > { %p1202_p1 = scmp.ge.s32.totalorder %s1393_s18, 2  ;;  %s867_s14 = sand.u32 1, %s1381_s15  }
 0x305   : > { %s868_s19 = scalar_lea.sflag [#allocation3], %s867_s14 }
 0x306   : > { %p1199_p2 = pnand %p1202_p1, %p1460_p6 }
 0x308   : > { %1376 = dma.done.wait (!%p1199_p2), %s868_s19, 16  }
 0x309   : > { %1378 = vsyncadd (!%p1199_p2), %s868_s19, 4294967280  ;;  %p14_p3 = scmp.ge.s32.totalorder %s1444_s21, 6   ;;  %s1814_s15 = smov %s1385_s16 }
 0x30a   : > { %s1815_s16 = smov %s1389_s17  ;;  %s1816_s17 = smov %s1454_s24 }
 0x30b   : > { %s1817_s18 = smov %s1444_s21  ;;  %16 = sbr.rel (!%p14_p3) target bundleno = 3 (0x3), region = 71 }
 0x312   :  { %872 = vsyncpa [#allocation3], 1 }
 0x313   :  { %874 = vsyncpa [#allocation3 + $0x1], 1 }

</bundles_post_ra>
